<compile_context>
chip_gen: v5e
topology: v5e:2x2
jax: 0.10.0
libtpu: 0.0.40
codegen_flags: <defaults>
</compile_context>

<pallas_src>
import functools

import numpy as np
import jax
import jax.numpy as jnp
from jax.experimental import pallas as pl
from jax.experimental.pallas import tpu as pltpu


@functools.lru_cache(maxsize=None)
def _avg_pool_matrix(seq_len: int, kernel_size: int) -> np.ndarray:
    """(T, T) matrix A such that trend = A @ x reproduces the torch forward:
    edge-replicate pad by K//2 on both sides, AvgPool1d(K, stride=1), drop last output."""
    assert kernel_size % 2 == 0, (
        "kernel_size must be even: the torch module needs 2*(K//2) == K for "
        "x - x_trend to be shape-compatible."
    )
    p = kernel_size // 2
    a = np.zeros((seq_len, seq_len), np.float32)
    for t in range(seq_len):                      # output time index (window start in padded series)
        for i in range(t, t + kernel_size):       # padded-series index inside the window
            j = min(max(i - p, 0), seq_len - 1)   # padded idx -> source idx (edge replication)
            a[t, j] += 1.0
    return a / np.float32(kernel_size)


def _decomp_kernel(a_ref, x_ref, seasonal_ref, trend_ref):
    """a_ref: (T, T) f32 averaging matrix (jit constant).
    x_ref: (T, N) input with N = B*D on lanes (lane-dense).
    Outputs: (T, N), same dtype as the caller's x."""
    x = x_ref[...].astype(jnp.float32)            # upcast in vregs (no-op for f32 input)
    trend = jnp.dot(a_ref[...], x, preferred_element_type=jnp.float32)   # one MXU pass
    trend_ref[...] = trend.astype(trend_ref.dtype)
    seasonal_ref[...] = (x - trend).astype(seasonal_ref.dtype)


@functools.partial(jax.jit, static_argnames="kernel_size")
def decomposition_forward(x, *, kernel_size):
    """x: (B, T, D). Returns (seasonal, trend), each (B, T, D), dtype of x."""
    B, T, D = x.shape
    N = B * D
    itemsize = jnp.dtype(x.dtype).itemsize

    a = jnp.asarray(_avg_pool_matrix(T, kernel_size))   # host-built (T,T) f32 constant

    # Lane-dense layout plumbing (outside the kernel): time -> sublanes, B*D -> lanes.
    x2d = jnp.transpose(x, (1, 0, 2)).reshape(T, N)

    vmem_spec = pl.BlockSpec(memory_space=pltpu.MemorySpace.VMEM)   # whole array, VMEM-resident

    seasonal2d, trend2d = pl.pallas_call(
        _decomp_kernel,
        out_shape=(
            jax.ShapeDtypeStruct((T, N), x.dtype),
            jax.ShapeDtypeStruct((T, N), x.dtype),
        ),
        in_specs=[vmem_spec, vmem_spec],
        out_specs=(vmem_spec, vmem_spec),
        cost_estimate=pl.CostEstimate(
            flops=2 * T * T * N,
            transcendentals=0,
            bytes_accessed=a.size * 4 + 3 * T * N * itemsize,
        ),
    )(a, x2d)

    def _back(y2d):
        return jnp.transpose(y2d.reshape(T, B, D), (1, 0, 2))

    return _back(seasonal2d), _back(trend2d)


def _reference_forward(x, kernel_size):
    """Pure numpy replica of the PyTorch DecompositionLayer.forward."""
    x = np.asarray(x, np.float32)                        # (B, T, D)
    p = kernel_size // 2
    front = np.repeat(x[:, :1, :], p, axis=1)
    end = np.repeat(x[:, -1:, :], p, axis=1)
    xp = np.concatenate([front, x, end], axis=1)         # (B, T + 2p, D)
    L = xp.shape[1]
    windows = np.stack(
        [xp[:, s:s + kernel_size, :].mean(axis=1) for s in range(L - kernel_size + 1)],
        axis=1,
    )                                                    # (B, T + 2p - K + 1, D)
    trend = windows[:, :-1, :]                           # drop last window -> (B, T, D)
    seasonal = x - trend
    return seasonal, trend


if __name__ == "__main__":
    B, T, D = 4, 32, 32          # B*D = 128 -> exactly lane-dense output stores
    KERNEL_SIZE = 16             # must be even (see assert in _avg_pool_matrix)

    key = jax.random.PRNGKey(0)
    x = jax.random.normal(key, (B, T, D), dtype=jnp.float32)

    seasonal, trend = decomposition_forward(x, kernel_size=KERNEL_SIZE)
    seasonal, trend = jax.block_until_ready((seasonal, trend))

    ref_seasonal, ref_trend = _reference_forward(np.asarray(x), KERNEL_SIZE)
    np.testing.assert_allclose(np.asarray(trend), ref_trend, rtol=1e-5, atol=1e-5)
    np.testing.assert_allclose(np.asarray(seasonal), ref_seasonal, rtol=1e-5, atol=1e-5)

    print("KERNEL_OK")
</pallas_src>

<mosaic_0001>
module attributes {stable_mosaic.version = 11 : i64} {
  func.func @_decomp_kernel(%arg0: memref<32x32xf32, #tpu.memory_space<vmem>>, %arg1: memref<32x128xf32, #tpu.memory_space<vmem>>, %arg2: memref<32x128xf32, #tpu.memory_space<vmem>>, %arg3: memref<32x128xf32, #tpu.memory_space<vmem>>) attributes {dimension_semantics = [], scalar_prefetch = 0 : i64, scratch_operands = 0 : i64, tpu.core_type = #tpu.core_type<tc>} {
    %c0 = arith.constant 0 : index
    %c0_0 = arith.constant 0 : index
    %0 = vector.load %arg1[%c0, %c0_0] : memref<32x128xf32, #tpu.memory_space<vmem>>, vector<32x128xf32>
    %c0_1 = arith.constant 0 : index
    %c0_2 = arith.constant 0 : index
    %1 = vector.load %arg0[%c0_1, %c0_2] : memref<32x32xf32, #tpu.memory_space<vmem>>, vector<32x32xf32>
    %cst = arith.constant dense<0.000000e+00> : vector<32x128xf32>
    %2 = tpu.matmul %1, %0, %cst {dimension_numbers = #tpu.dot_dimension_numbers<[1], [0], [0], [1], [0, 0, 1, 1], [], []>} : vector<32x32xf32>, vector<32x128xf32>, vector<32x128xf32> -> vector<32x128xf32>
    %c0_3 = arith.constant 0 : index
    %c0_4 = arith.constant 0 : index
    %3 = vector.load %arg3[%c0_3, %c0_4] : memref<32x128xf32, #tpu.memory_space<vmem>>, vector<32x128xf32>
    tpu.vector_store %arg3[%c0_3, %c0_4], %2 {strides = array<i32>} : memref<32x128xf32, #tpu.memory_space<vmem>>, vector<32x128xf32>,
    %4 = arith.subf %0, %2 : vector<32x128xf32>
    %c0_5 = arith.constant 0 : index
    %c0_6 = arith.constant 0 : index
    %5 = vector.load %arg2[%c0_5, %c0_6] : memref<32x128xf32, #tpu.memory_space<vmem>>, vector<32x128xf32>
    tpu.vector_store %arg2[%c0_5, %c0_6], %4 {strides = array<i32>} : memref<32x128xf32, #tpu.memory_space<vmem>>, vector<32x128xf32>,
    return
  }
}

</mosaic_0001>

<bundles_post_ra>
// kernel: decomposition_forward.1
= control target key start
LH: loop header
LB: loop body
LE: loop exit
PB: predicated region body
PF: predicated region fallthrough
CT: control target
= control target key end

     0   :  { %vm21_vm0 = vcmask 261120   ;;  %s167_s1 = inlined_call_operand.vmem [shape: f32[32,128], index: 1, kind: input, shape index: {}]   ;;  %s168_s0 = inlined_call_operand.vmem [shape: f32[32,32], index: 0, kind: input, shape index: {}]   ;;  %s169_s3 = inlined_call_operand.vmem [shape: f32[32,128], index: 3, kind: output, shape index: {1}]   ;;  %s170_s2 = inlined_call_operand.vmem [shape: f32[32,128], index: 2, kind: output, shape index: {0}]  }
   0x1   :  { %v16_v0 = vld [vmem:[%s167_s1 + $0x18] sm:$0xff]  ;;  %v15_v1 = vld [vmem:[%s167_s1 + $0x10] sm:$0xff]  ;;  %v14_v2 = vld [vmem:[%s167_s1 + $0x8] sm:$0xff] }
   0x2   :  { %88 = vmatpush.msra.mxu2 %v16_v0  ;;  %89 = vmatpush.msra.mxu3 %v16_v0  ;;  %v13_v3 = vld [vmem:[%s167_s1] sm:$0xff]  ;;  %v19_v4 = vld [vmem:[%s168_s0 + $0x10] sm:$0xff]  ;;  %v20_v5 = vld [vmem:[%s168_s0 + $0x18] sm:$0xff] }
   0x3   :  { %46 = vmatpush.msra.mxu0 %v16_v0  ;;  %87 = vmatpush.msra.mxu1 %v16_v0  ;;  %v17_v6 = vld [vmem:[%s168_s0] sm:$0xff]  ;;  %v18_v7 = vld [vmem:[%s168_s0 + $0x8] sm:$0xff] }
   0x4   :  { %91 = vmatpush.msra.mxu2 %v15_v1  ;;  %92 = vmatpush.msra.mxu3 %v15_v1 }
   0x5   :  { %47 = vmatpush.msra.mxu0 %v15_v1  ;;  %90 = vmatpush.msra.mxu1 %v15_v1 }
   0x6   :  { %94 = vmatpush.msra.mxu2 %v14_v2  ;;  %95 = vmatpush.msra.mxu3 %v14_v2 }
   0x7   :  { %48 = vmatpush.msra.mxu0 %v14_v2  ;;  %93 = vmatpush.msra.mxu1 %v14_v2 }
   0x8   :  { %97 = vmatpush.msra.mxu2 %v13_v3  ;;  %98 = vmatpush.msra.mxu3 %v13_v3 }
   0x9   :  { %85 = vmatmul.msk.f32.vlgmr.msra.gmra.mxu2 %vm21_vm0, %v19_v4  ;;  %86 = vmatmul.msk.f32.vlgmr.msra.gmra.mxu3 %vm21_vm0, %v20_v5 }
   0xa   :  { %49 = vmatpush.msra.mxu0 %v13_v3  ;;  %96 = vmatpush.msra.mxu1 %v13_v3 }
   0xb   :  { %83 = vmatmul.msk.f32.vlgmr.msra.gmra.mxu0 %vm21_vm0, %v17_v6  ;;  %84 = vmatmul.msk.f32.vlgmr.msra.gmra.mxu1 %vm21_vm0, %v18_v7 }
  0x88   :  { %v51_v8 = vpop.f32.mrf.mxu0  ;;  %v54_v9 = vpop.f32.mrf.mxu1 }
  0x89   :  { %63 = vst [vmem:[%s169_s3] sm:$0xff] %v51_v8  ;;  %v67_v10 = vsub.f32 %v13_v3, %v51_v8  ;;  %v68_v11 = vsub.f32 %v14_v2, %v54_v9 }
  0x8a   :  { %64 = vst [vmem:[%s169_s3 + $0x8] sm:$0xff] %v54_v9 }
  0x8b   :  { %71 = vst [vmem:[%s170_s2] sm:$0xff] %v67_v10 }
  0x8c   :  { %72 = vst [vmem:[%s170_s2 + $0x8] sm:$0xff] %v68_v11  ;;  %v57_v12 = vpop.f32.mrf.mxu2  ;;  %v60_v13 = vpop.f32.mrf.mxu3 }
  0x8d   :  { %65 = vst [vmem:[%s169_s3 + $0x10] sm:$0xff] %v57_v12  ;;  %v69_v14 = vsub.f32 %v15_v1, %v57_v12  ;;  %v70_v15 = vsub.f32 %v16_v0, %v60_v13 }
  0x8e   :  { %66 = vst [vmem:[%s169_s3 + $0x18] sm:$0xff] %v60_v13 }
  0x8f   :  { %73 = vst [vmem:[%s170_s2 + $0x10] sm:$0xff] %v69_v14 }
  0x90   :  { %74 = vst [vmem:[%s170_s2 + $0x18] sm:$0xff] %v70_v15 }

</bundles_post_ra>
